<compile_context>
chip_gen: v7x
topology: tpu7x:2x2x1
jax: 0.10.0
libtpu: 0.0.40
codegen_flags: <defaults>
</compile_context>

<pallas_src>
import jax
import jax.numpy as jnp
from jax.experimental import pallas as pl
from jax.experimental.pallas import tpu as pltpu


def _round_up(x, m):
    return (x + m - 1) // m * m


def _dueling_q_kernel(xT_ref, act_ref, w1_ref, b1_ref, wa_ref, ba_ref, out_ref):
    # Transposed (batch-on-lanes) orientation:
    #   xT:  (Fp, TB) bf16   features^T for this batch tile
    #   act: (1, TB)  int32  taken action per batch column
    #   w1:  (Fp, Fp) bf16   comb_layer1 weight, torch (out, in) layout
    #   b1:  (Fp, 1)  f32
    #   wa:  (A, Fp)  bf16   action_layer weight, torch (out, in) layout
    #   ba:  (A, 1)   f32
    #   out: (1, TB)  f32    lane-dense q-values of the taken actions
    comb1 = jnp.dot(w1_ref[...], xT_ref[...],
                    preferred_element_type=jnp.float32)          # (Fp, TB) f32
    comb1 = jnp.maximum(comb1 + b1_ref[...], 0.0)                # bias + ReLU in f32

    adv = jnp.dot(wa_ref[...], comb1.astype(wa_ref.dtype),
                  preferred_element_type=jnp.float32) + ba_ref[...]   # (A, TB) f32
    # NOTE: for very large num_actions, gather only the taken Wa row per batch
    # column instead of computing the full (A, TB) advantage matrix.  At small
    # A (<= ~128) the full matmul + masked sublane-sum below is cheaper.

    row = jax.lax.broadcasted_iota(jnp.int32, adv.shape, 0)      # (A, TB)
    taken = jnp.sum(jnp.where(row == act_ref[...], adv, 0.0),
                    axis=0, keepdims=True)                       # (1, TB) lane-dense
    out_ref[...] = taken.astype(out_ref.dtype)


def dueling_q_forward(features, actions, params):
    """features: (B, F) f32, actions: (B,) int -> (B, 1) f32."""
    B, F = features.shape
    A = params["wa"].shape[0]

    # Pad feature dim to full 128-lane vregs; tile batch on the lane axis.
    Fp = _round_up(F, 128)
    if B > 128:
        TB = 128
        Bp = _round_up(B, TB)
    else:
        TB = Bp = B          # single full-extent tile

    # --- wrapper-side layout plumbing (padding, transpose, dtype casts) ---
    x_p = jnp.pad(features, ((0, Bp - B), (0, Fp - F))).astype(jnp.bfloat16)
    xT = x_p.T                                                    # (Fp, Bp) bf16
    act_p = jnp.pad(actions.astype(jnp.int32), (0, Bp - B)).reshape(1, Bp)

    w1_p = jnp.pad(params["w1"], ((0, Fp - F), (0, Fp - F))).astype(jnp.bfloat16)
    b1_p = jnp.pad(params["b1"], (0, Fp - F)).reshape(Fp, 1).astype(jnp.float32)
    wa_p = jnp.pad(params["wa"], ((0, 0), (0, Fp - F))).astype(jnp.bfloat16)
    ba_p = params["ba"].reshape(A, 1).astype(jnp.float32)

    grid_spec = pltpu.PrefetchScalarGridSpec(
        num_scalar_prefetch=0,
        grid=(Bp // TB,),
        in_specs=[
            pl.BlockSpec((Fp, TB), lambda i: (0, i)),   # features^T: streamed per tile
            pl.BlockSpec((1, TB), lambda i: (0, i)),    # actions:    streamed per tile
            # Weights / biases: constant block index -> VMEM-resident across steps.
            # For F >= ~2048 on v7x (64 MiB VMEM) switch this to a K-tiled
            # reduction grid with an f32 accumulator instead of one big block.
            pl.BlockSpec((Fp, Fp), lambda i: (0, 0)),   # W1
            pl.BlockSpec((Fp, 1), lambda i: (0, 0)),    # b1
            pl.BlockSpec((A, Fp), lambda i: (0, 0)),    # Wa
            pl.BlockSpec((A, 1), lambda i: (0, 0)),     # ba
        ],
        out_specs=pl.BlockSpec((1, TB), lambda i: (0, i)),  # lane-dense output
    )

    out = pl.pallas_call(
        _dueling_q_kernel,
        out_shape=jax.ShapeDtypeStruct((1, Bp), jnp.float32),
        grid_spec=grid_spec,
        compiler_params=pltpu.CompilerParams(
            dimension_semantics=("parallel",),          # v7x: shard batch over 2 TCs
            vmem_limit_bytes=64 * 1024 * 1024,          # raise scoped VMEM, v7x-safe cap
        ),
    )(xT, act_p, w1_p, b1_p, wa_p, ba_p)

    return out[0, :B].reshape(B, 1)


def init_params(key, model_features, num_actions):
    """Deterministic init mimicking PyTorch nn.Linear default (U(+-1/sqrt(fan_in)))."""
    ks = jax.random.split(key, 4)

    def lin(k, fan_in, fan_out):
        kw, kb = jax.random.split(k)
        bound = 1.0 / jnp.sqrt(fan_in)
        w = jax.random.uniform(kw, (fan_out, fan_in), jnp.float32, -bound, bound)
        b = jax.random.uniform(kb, (fan_out,), jnp.float32, -bound, bound)
        return w, b

    w1, b1 = lin(ks[0], model_features, model_features)      # comb_layer1
    w2, b2 = lin(ks[1], model_features, model_features)      # comb_layer2 (unused in fwd)
    wa, ba = lin(ks[2], model_features, 1 * num_actions)     # action_layer
    wm, bm = lin(ks[3], model_features, 1)                   # mean_layer (unused in fwd)
    return {"w1": w1, "b1": b1, "w2": w2, "b2": b2,
            "wa": wa, "ba": ba, "wm": wm, "bm": bm}


def reference_forward(features, actions, params):
    """Pure-JAX reference mirroring the kernel's dtype policy
    (bf16 matmul inputs, f32 accumulation, f32 elementwise)."""
    xb = features.astype(jnp.bfloat16)
    w1b = params["w1"].astype(jnp.bfloat16)
    wab = params["wa"].astype(jnp.bfloat16)
    comb1 = jnp.maximum(
        jnp.dot(xb, w1b.T, preferred_element_type=jnp.float32) + params["b1"], 0.0)
    adv = jnp.dot(comb1.astype(jnp.bfloat16), wab.T,
                  preferred_element_type=jnp.float32) + params["ba"]       # (B, A)
    return jnp.take_along_axis(adv, actions.reshape(-1, 1), axis=1)        # (B, 1)


if __name__ == "__main__":
    model_features = 32
    num_targets = 1
    num_actions = 4
    batch = 200   # padded to 256 internally -> two 128-lane batch tiles (grid=(2,))

    key = jax.random.PRNGKey(0)
    kp, kx, ka = jax.random.split(key, 3)
    params = init_params(kp, model_features, num_actions)
    features = jax.random.normal(kx, (batch, model_features), jnp.float32)
    actions = jax.random.randint(ka, (batch,), 0, num_actions, jnp.int32)

    out = dueling_q_forward(features, actions, params)
    out = jax.block_until_ready(out)
    assert out.shape == (batch, 1)

    ref = reference_forward(features, actions, params)
    assert jnp.allclose(out, ref, atol=1e-3, rtol=1e-3), float(
        jnp.max(jnp.abs(out - ref)))
    print("KERNEL_OK")
</pallas_src>

<mosaic_0001>
module attributes {stable_mosaic.version = 11 : i64} {
  func.func @_dueling_q_kernel(%arg0: i32, %arg1: memref<128x128xbf16, #tpu.memory_space<vmem>>, %arg2: memref<1x128xi32, #tpu.memory_space<vmem>>, %arg3: memref<128x128xbf16, #tpu.memory_space<vmem>>, %arg4: memref<128x1xf32, #tpu.memory_space<vmem>>, %arg5: memref<4x128xbf16, #tpu.memory_space<vmem>>, %arg6: memref<4x1xf32, #tpu.memory_space<vmem>>, %arg7: memref<1x128xf32, #tpu.memory_space<vmem>>) attributes {dimension_semantics = [#tpu.dimension_semantics<parallel>], iteration_bounds = array<i64: 2>, scalar_prefetch = 0 : i64, scratch_operands = 0 : i64, tpu.core_type = #tpu.core_type<tc>, window_params = [{transform_indices = @transform_0, window_bounds = array<i64: 128, 128>}, {transform_indices = @transform_1, window_bounds = array<i64: 1, 128>}, {pipeline_mode = #tpu.pipeline_mode<synchronous>, transform_indices = @transform_2, window_bounds = array<i64: 128, 128>}, {pipeline_mode = #tpu.pipeline_mode<synchronous>, transform_indices = @transform_3, window_bounds = array<i64: 128, 1>}, {pipeline_mode = #tpu.pipeline_mode<synchronous>, transform_indices = @transform_4, window_bounds = array<i64: 4, 128>}, {pipeline_mode = #tpu.pipeline_mode<synchronous>, transform_indices = @transform_5, window_bounds = array<i64: 4, 1>}, {transform_indices = @transform_6, window_bounds = array<i64: 1, 128>}]} {
    %c0 = arith.constant 0 : index
    %c0_0 = arith.constant 0 : index
    %0 = vector.load %arg3[%c0, %c0_0] : memref<128x128xbf16, #tpu.memory_space<vmem>>, vector<128x128xbf16>
    %c0_1 = arith.constant 0 : index
    %c0_2 = arith.constant 0 : index
    %1 = vector.load %arg1[%c0_1, %c0_2] : memref<128x128xbf16, #tpu.memory_space<vmem>>, vector<128x128xbf16>
    %cst = arith.constant dense<0.000000e+00> : vector<128x128xf32>
    %2 = tpu.matmul %0, %1, %cst {dimension_numbers = #tpu.dot_dimension_numbers<[1], [0], [0], [1], [0, 0, 1, 1], [], []>} : vector<128x128xbf16>, vector<128x128xbf16>, vector<128x128xf32> -> vector<128x128xf32>
    %c0_3 = arith.constant 0 : index
    %c0_4 = arith.constant 0 : index
    %3 = vector.load %arg4[%c0_3, %c0_4] : memref<128x1xf32, #tpu.memory_space<vmem>>, vector<128x1xf32>
    %4 = vector.broadcast %3 : vector<128x1xf32> to vector<128x128xf32>
    %5 = arith.addf %2, %4 : vector<128x128xf32>
    %cst_5 = arith.constant 0.000000e+00 : f32
    %6 = vector.broadcast %cst_5 : f32 to vector<128x128xf32>
    %7 = arith.maximumf %5, %6 : vector<128x128xf32>
    %c0_6 = arith.constant 0 : index
    %c0_7 = arith.constant 0 : index
    %8 = vector.load %arg5[%c0_6, %c0_7] : memref<4x128xbf16, #tpu.memory_space<vmem>>, vector<4x128xbf16>
    %9 = arith.truncf %7 : vector<128x128xf32> to vector<128x128xbf16>
    %cst_8 = arith.constant dense<0.000000e+00> : vector<4x128xf32>
    %10 = tpu.matmul %8, %9, %cst_8 {dimension_numbers = #tpu.dot_dimension_numbers<[1], [0], [0], [1], [0, 0, 1, 1], [], []>} : vector<4x128xbf16>, vector<128x128xbf16>, vector<4x128xf32> -> vector<4x128xf32>
    %c0_9 = arith.constant 0 : index
    %c0_10 = arith.constant 0 : index
    %11 = vector.load %arg6[%c0_9, %c0_10] : memref<4x1xf32, #tpu.memory_space<vmem>>, vector<4x1xf32>
    %12 = vector.broadcast %11 : vector<4x1xf32> to vector<4x128xf32>
    %13 = arith.addf %10, %12 : vector<4x128xf32>
    %14 = tpu.iota {dimensions = array<i32: 0>} : vector<4x128xi32>
    %c0_11 = arith.constant 0 : index
    %c0_12 = arith.constant 0 : index
    %15 = vector.load %arg2[%c0_11, %c0_12] : memref<1x128xi32, #tpu.memory_space<vmem>>, vector<1x128xi32>
    %16 = vector.broadcast %15 : vector<1x128xi32> to vector<4x128xi32>
    %17 = arith.cmpi eq, %14, %16 : vector<4x128xi32>
    %cst_13 = arith.constant 0.000000e+00 : f32
    %18 = vector.broadcast %cst_13 : f32 to vector<4x128xf32>
    %19 = arith.select %17, %13, %18 : vector<4x128xi1>, vector<4x128xf32>
    %cst_14 = arith.constant dense<0.000000e+00> : vector<128xf32>
    %20 = vector.multi_reduction <add>, %19, %cst_14 [0] : vector<4x128xf32> to vector<128xf32>
    %21 = vector.shape_cast %20 : vector<128xf32> to vector<1x128xf32>
    %c0_15 = arith.constant 0 : index
    %c0_16 = arith.constant 0 : index
    %22 = vector.load %arg7[%c0_15, %c0_16] : memref<1x128xf32, #tpu.memory_space<vmem>>, vector<1x128xf32>
    tpu.vector_store %arg7[%c0_15, %c0_16], %21 {strides = array<i32>} : memref<1x128xf32, #tpu.memory_space<vmem>>, vector<1x128xf32>,
    return
  }
  func.func @transform_0(%arg0: i32) -> (i32, i32) {
    %c0_i32 = arith.constant 0 : i32
    %c0_i32_0 = arith.constant 0 : i32
    return %c0_i32, %arg0 : i32, i32
  }
  func.func @transform_1(%arg0: i32) -> (i32, i32) {
    %c0_i32 = arith.constant 0 : i32
    %c0_i32_0 = arith.constant 0 : i32
    return %c0_i32, %arg0 : i32, i32
  }
  func.func @transform_2(%arg0: i32) -> (i32, i32) {
    %c0_i32 = arith.constant 0 : i32
    %c0_i32_0 = arith.constant 0 : i32
    %c0_i32_1 = arith.constant 0 : i32
    return %c0_i32, %c0_i32_0 : i32, i32
  }
  func.func @transform_3(%arg0: i32) -> (i32, i32) {
    %c0_i32 = arith.constant 0 : i32
    %c0_i32_0 = arith.constant 0 : i32
    %c0_i32_1 = arith.constant 0 : i32
    return %c0_i32, %c0_i32_0 : i32, i32
  }
  func.func @transform_4(%arg0: i32) -> (i32, i32) {
    %c0_i32 = arith.constant 0 : i32
    %c0_i32_0 = arith.constant 0 : i32
    %c0_i32_1 = arith.constant 0 : i32
    return %c0_i32, %c0_i32_0 : i32, i32
  }
  func.func @transform_5(%arg0: i32) -> (i32, i32) {
    %c0_i32 = arith.constant 0 : i32
    %c0_i32_0 = arith.constant 0 : i32
    %c0_i32_1 = arith.constant 0 : i32
    return %c0_i32, %c0_i32_0 : i32, i32
  }
  func.func @transform_6(%arg0: i32) -> (i32, i32) {
    %c0_i32 = arith.constant 0 : i32
    %c0_i32_0 = arith.constant 0 : i32
    return %c0_i32, %arg0 : i32, i32
  }
}

</mosaic_0001>

<bundles_post_ra>
// kernel: tpu_custom_call.1
= control target key start
LH: loop header
LB: loop body
LE: loop exit
PB: predicated region body
PF: predicated region fallthrough
CT: control target
= control target key end

     0   :  { %s1790_s0 = inlined_call_operand.hbm [shape: bf16[128,256], index: 0, kind: input, shape index: {}]   ;;  %s1791_s1 = inlined_call_operand.hbm [shape: s32[1,256], index: 1, kind: input, shape index: {}]   ;;  %s1792_s2 = inlined_call_operand.hbm [shape: bf16[128,128], index: 2, kind: input, shape index: {}]   ;;  %s1793_s3 = inlined_call_operand.hbm [shape: f32[128,1], index: 3, kind: input, shape index: {}]   ;;  %s1794_s4 = inlined_call_operand.hbm [shape: bf16[4,128], index: 4, kind: input, shape index: {}]   ;;  %s1795_s5 = inlined_call_operand.hbm [shape: f32[4,1], index: 5, kind: input, shape index: {}]   ;;  %s1796_s6 = inlined_call_operand.hbm [shape: f32[1,256], index: 6, kind: output, shape index: {}]  }
   0x1   :  { %1803 = sst [smem:[#allocation20_spill]] %s1790_s0 }
   0x2   :  { %1804 = sst [smem:[#allocation21_spill]] %s1792_s2 }
   0x3   :  { %1805 = sst [smem:[#allocation22_spill]] %s1793_s3 }
   0x4   :  { %1806 = sst [smem:[#allocation23_spill]] %s1794_s4 }
   0x5   :  { %11 = vsyncpa [#allocation3], 0 }
   0x6   :  { %13 = vsyncpa [#allocation3 + $0x1], 0 }
   0x7   :  { %14 = vsyncpa [#allocation6], 0 }
   0x8   :  { %16 = vsyncpa [#allocation6 + $0x1], 0 }
   0x9   :  { %17 = vsyncpa [#allocation9], 0 }
   0xa   :  { %18 = vsyncpa [#allocation12], 0 }
   0xb   :  { %19 = vsyncpa [#allocation4], 0 }
   0xc   :  { %21 = vsyncpa [#allocation4 + $0x1], 0  ;;  %s1439_s21 = smov 0   ;;  %s1441_s22 = smov 0  }
   0xd   :  { %s1443_s23 = smov 0   ;;  %s1445_s24 = smov 0  }
   0xe LB: > { %s1460_s25 = sadd.s32 4294967295, %s1388_s24   ;;  %s904_s26 = sadd.s32 4294967294, %s1388_s24   ;;  %s1388_s24 = sphi %s1445_s24, %s1836_s24   ;;  %s1384_s23 = sphi %s1443_s23, %s1835_s23   ;;  %s1380_s22 = sphi %s1441_s22, %s1834_s22   ;;  %s1376_s21 = sphi %s1439_s21, %s1833_s21  }
   0xf   : > { %p47_p0 = scmp.ne.s32.totalorder %s1380_s22, %s1376_s21  ;;  %p1797_p1 = scmp.eq.s32.totalorder %s1460_s25, 0 }
  0x10   : > { %p187_p3 = scmp.eq.s32.totalorder %s904_s26, 1  ;;  %p905_p5 = scmp.ge.s32.totalorder %s1388_s24, 1 }
  0x11   : > { %p1469_p4 = por %p1797_p1, %p47_p0  ;;  %p194_p7 = scmp.lt.s32.totalorder %s1388_s24, 3 }
  0x12   : > { %p1474_p6 = por %p187_p3, %p47_p0  ;;  %s1390_s30 = smov [#allocation7]  }
  0x13   : > { %s1807_s27 = scalar_select %p1469_p4, 1, 0 }
  0x14   : > { %s1808_s28 = scalar_select %p1474_p6, 1, 0 }
  0x15   : > { %p1479_p8 = pnand %p905_p5, %p194_p7  ;;  %s206_s7 = sshll.u32 %s1390_s30, 4  ;;  %s1483_s7 = int_to_ptr.vmem [resolvable:$true] %s206_s7 }
  0x16   : > { %s1391_s9 = smov [#allocation8]   ;;  %s1811_s2 = sld [smem:[#allocation21_spill]] }
  0x17   : > { %s1809_s29 = scalar_select %p1479_p8, 1, 0 }
  0x18   : > { %p1039_p9 = pneg %p1479_p8  ;;  %s219_s10 = sshll.u32 %s1391_s9, 4  ;;  %s1494_s10 = int_to_ptr.vmem [resolvable:$true] %s219_s10 }
  0x1a   : > { %p1490_p11 = pnand %p1039_p9, %p1797_p1 }
  0x1c   : > { %s1134_s13 = scalar_lea.hbm %s1811_s2, 1024  ;;  %p1504_p13 = pneg %p1490_p11 }
  0x1d   : > { %p1135_p12 = scmp.ne.s32.totalorder %s1811_s2, %s1134_s13  ;;  %p1141_p5 = scmp.lt.u32.totalorder %s1134_s13, %s1811_s2 }
  0x1f   : > { %p1137_p0 = pnand %p1504_p13, %p1135_p12 }
  0x21   : > { %p1138_p3 = pneg %p1137_p0 }
  0x23   : > { %p1143_p7 = pnand %p1141_p5, %p1138_p3 }
  0x25   : > { %1146 = shalt.err (!%p1143_p7)
}
  0x26   : > { %s1147_s19 = scalar_lea.vmem %s1483_s7, 1024  ;;  %p1155_p2 = scmp.lt.s32.totalorder %s1483_s7, %s1483_s7 }
  0x27   : > { %p1148_p9 = scmp.ne.s32.totalorder %s1483_s7, %s1147_s19  ;;  %p1156_p6 = scmp.lt.s32.totalorder %s1147_s19, %s1147_s19 }
  0x29   : > { %p1150_p10 = pnand %p1148_p9, %p1504_p13  ;;  %p1157_p12 = por %p1156_p6, %p1155_p2 }
  0x2b   : > { %p1151_p1 = pneg %p1150_p10 }
  0x2d   : > { %p1158_p0 = pnand %p1157_p12, %p1151_p1 }
  0x2f   : > { %1161 = shalt.err (!%p1158_p0)
}
  0x30   : > { %s1798_s20 = smov 64   ;;  %s1799_s26 = smov 4  }
  0x31   : > { %1042 = dma.hbm_to_vmem [thread:$0]  (!%p1490_p11), %s1811_s2, 1024, %s1483_s7, [#allocation6], %s1798_s20, %s1798_s20, %s1799_s26  }
  0x32   : > { %s1813_s3 = sld [smem:[#allocation22_spill]] }
  0x38   : > { %s1162_s13 = scalar_lea.hbm %s1813_s3, 2048 }
  0x39   : > { %p1163_p1 = scmp.ne.s32.totalorder %s1813_s3, %s1162_s13  ;;  %p1169_p10 = scmp.lt.u32.totalorder %s1162_s13, %s1813_s3 }
  0x3b   : > { %p1165_p2 = pnand %p1163_p1, %p1504_p13 }
  0x3d   : > { %p1166_p6 = pneg %p1165_p2 }
  0x3f   : > { %p1171_p3 = pnand %p1169_p10, %p1166_p6 }
  0x41   : > { %1174 = shalt.err (!%p1171_p3)
}
  0x42   : > { %s1175_s7 = scalar_lea.vmem %s1494_s10, 2048  ;;  %p1183_p12 = scmp.lt.s32.totalorder %s1494_s10, %s1494_s10 }
  0x43   : > { %p1176_p5 = scmp.ne.s32.totalorder %s1494_s10, %s1175_s7  ;;  %p1184_p0 = scmp.lt.s32.totalorder %s1175_s7, %s1175_s7 }
  0x45   : > { %p1178_p7 = pnand %p1176_p5, %p1504_p13  ;;  %p1185_p1 = por %p1184_p0, %p1183_p12 }
  0x47   : > { %p1179_p9 = pneg %p1178_p7 }
  0x49   : > { %p1186_p2 = pnand %p1185_p1, %p1179_p9 }
  0x4b   : > { %1189 = shalt.err (!%p1186_p2)
}
  0x4c   : > { %s1394_s19 = smov 128   ;;  %s1395_s30 = smov 8  }
  0x4d   : > { %1045 = dma.hbm_to_vmem [thread:$0]  (!%p1490_p11), %s1813_s3, 2048, %s1494_s10, [#allocation9], %s1394_s19, %s1394_s19, %s1395_s30  }
  0x4e   : > { %s1396_s12 = smov [#allocation10]   ;;  %s1397_s14 = smov [#allocation11]  }
  0x4f   : > { %s233_s13 = sshll.u32 %s1396_s12, 4  ;;  %s244_s15 = sshll.u32 %s1397_s14, 4  ;;  %s234_s13 = int_to_ptr.vmem [resolvable:$true] %s233_s13  ;;  %s1553_s15 = int_to_ptr.vmem [resolvable:$true] %s244_s15 }
  0x50   : > { %s1814_s4 = sld [smem:[#allocation23_spill]] }
  0x56   : > { %s1190_s7 = scalar_lea.hbm %s1814_s4, 32 }
  0x57   : > { %p1191_p6 = scmp.ne.s32.totalorder %s1814_s4, %s1190_s7  ;;  %p1197_p5 = scmp.lt.u32.totalorder %s1190_s7, %s1814_s4 }
  0x59   : > { %p1193_p10 = pnand %p1191_p6, %p1504_p13 }
  0x5b   : > { %p1194_p3 = pneg %p1193_p10 }
  0x5d   : > { %p1199_p7 = pnand %p1197_p5, %p1194_p3 }
  0x5f   : > { %1202 = shalt.err (!%p1199_p7)
}
  0x60   : > { %s1203_s30 = scalar_lea.vmem %s234_s13, 32  ;;  %p1211_p1 = scmp.lt.s32.totalorder %s234_s13, %s234_s13 }
  0x61   : > { %p1204_p9 = scmp.ne.s32.totalorder %s234_s13, %s1203_s30  ;;  %p1212_p2 = scmp.lt.s32.totalorder %s1203_s30, %s1203_s30 }
  0x63   : > { %p1206_p12 = pnand %p1204_p9, %p1504_p13  ;;  %p1213_p4 = por %p1212_p2, %p1211_p1 }
  0x65   : > { %p1207_p0 = pneg %p1206_p12 }
  0x67   : > { %p1214_p8 = pnand %p1213_p4, %p1207_p0 }
  0x69   : > { %1217 = shalt.err (!%p1214_p8)
}
  0x6a   : > { %1048 = dma.hbm_to_vmem [thread:$0]  (!%p1490_p11), %s1814_s4, 32, %s234_s13, [#allocation9]  }
  0x6b   : > { %s1218_s14 = scalar_lea.hbm %s1795_s5, 64 }
  0x6c   : > { %p1219_p6 = scmp.ne.s32.totalorder %s1795_s5, %s1218_s14  ;;  %p1225_p4 = scmp.lt.u32.totalorder %s1218_s14, %s1795_s5 }
  0x6e   : > { %p1221_p10 = pnand %p1219_p6, %p1504_p13 }
  0x70   : > { %p1222_p3 = pneg %p1221_p10 }
  0x72   : > { %p1227_p8 = pnand %p1225_p4, %p1222_p3 }
  0x74   : > { %1230 = shalt.err (!%p1227_p8)
}
  0x75   : > { %s1231_s13 = scalar_lea.vmem %s1553_s15, 64  ;;  %p1239_p12 = scmp.lt.s32.totalorder %s1553_s15, %s1553_s15 }
  0x76   : > { %p1232_p5 = scmp.ne.s32.totalorder %s1553_s15, %s1231_s13  ;;  %p1240_p0 = scmp.lt.s32.totalorder %s1231_s13, %s1231_s13 }
  0x78   : > { %p1234_p7 = pnand %p1232_p5, %p1504_p13  ;;  %p1241_p1 = por %p1240_p0, %p1239_p12 }
  0x7a   : > { %p1235_p9 = pneg %p1234_p7 }
  0x7c   : > { %p1242_p2 = pnand %p1241_p1, %p1235_p9 }
  0x7e   : > { %1245 = shalt.err (!%p1242_p2)
}
  0x7f   : > { %1051 = dma.hbm_to_vmem [thread:$0]  (!%p1490_p11), %s1795_s5, 64, %s1553_s15, [#allocation12]  }
  0x80   : > { %s1597_s16 = sadd.s32 1, %s1388_s24   ;;  %s34_s20 = sadd.s32 1, %s1384_s23 }
  0x81   : > { %s31_s8 = ssub.s32 %s1388_s24, %s1597_s16  ;;  %p41_p6 = scmp.ne.s32.totalorder %s1384_s23, %s1380_s22 }
  0x82   : > { %p32_p13 = scmp.eq.s32.totalorder %s31_s8, 0  ;;  %p42_p10 = scmp.eq.s32.totalorder %s1388_s24, 0 }
  0x83   : > { %p1815_p4 = scmp.eq.s32.totalorder %s1460_s25, 1  ;;  %p1067_p5 = scmp.lt.s32.totalorder %s1388_s24, 2 }
  0x84   : > { %s1606_s26 = scalar_select %p32_p13, %s1384_s23, %s34_s20  }
  0x85   : > { %p43_p3 = por %p42_p10, %p41_p6  ;;  %p1610_p8 = por %p1815_p4, %p41_p6 }
  0x86   : > { %s1616_s12 = sand.u32 1, %s1384_s23   ;;  %s912_s14 = sshll.u32 %s1388_s24, 6 }
  0x87   : > { %s1816_s11 = scalar_select %p1610_p8, 1, 0 }
  0x88   : > { %s911_s15 = sshll.u32 %s1616_s12, 6  ;;  %s1817_s0 = sld [smem:[#allocation20_spill]] }
  0x89   : > { %s259_s9 = scalar_lea.vmem [#allocation2], %s911_s15  ;;  %p1627_p11 = pnand %p1067_p5, %p43_p3 }
  0x8a   : > { %s265_s13 = sshll.u32 %s259_s9, 4  ;;  %s256_s8 = scalar_lea.sflag [#allocation3], %s1616_s12  ;;  %s1625_s13 = int_to_ptr.vmem [resolvable:$true] %s265_s13 }
  0x8b   : > { %p1248_p9 = pneg %p1627_p11 }
  0x8e   : > { %s1623_s7 = scalar_lea.hbm %s1817_s0, %s912_s14  ;;  %s1251_s17 = scalar_lea.hbm %s1817_s0, 2048 }
  0x8f   : > { %s1246_s20 = scalar_lea.hbm %s1623_s7, 1024  ;;  %p1252_p1 = scmp.lt.u32.totalorder %s1623_s7, %s1817_s0 }
  0x90   : > { %p1247_p7 = scmp.ne.s32.totalorder %s1623_s7, %s1246_s20  ;;  %p1253_p2 = scmp.lt.u32.totalorder %s1251_s17, %s1246_s20 }
  0x91   : > { %p1255_p6 = scmp.lt.u32.totalorder %s1246_s20, %s1623_s7 }
  0x92   : > { %p1249_p12 = pnand %p1248_p9, %p1247_p7  ;;  %p1254_p13 = por %p1253_p2, %p1252_p1 }
  0x94   : > { %p1250_p0 = pneg %p1249_p12  ;;  %p1256_p10 = por %p1255_p6, %p1254_p13 }
  0x96   : > { %p1257_p3 = pnand %p1256_p10, %p1250_p0 }
  0x98   : > { %1260 = shalt.err (!%p1257_p3)
}
  0x99   : > { %s1261_s30 = scalar_lea.vmem %s1625_s13, 1024  ;;  %s1398_s15 = smov [#allocation2]  }
  0x9a   : > { %p1262_p4 = scmp.ne.s32.totalorder %s1625_s13, %s1261_s30  ;;  %s1266_s14 = sshll.u32 %s1398_s15, 4  ;;  %s1267_s14 = int_to_ptr.vmem [resolvable:$false] %s1266_s14 }
  0x9b   : > { %s1268_s18 = scalar_lea.vmem %s1267_s14, 2048  ;;  %p1269_p12 = scmp.lt.s32.totalorder %s1625_s13, %s1267_s14 }
  0x9c   : > { %p1264_p5 = pnand %p1262_p4, %p1248_p9  ;;  %p1270_p1 = scmp.lt.s32.totalorder %s1268_s18, %s1261_s30 }
  0x9e   : > { %p1265_p7 = pneg %p1264_p5  ;;  %p1271_p2 = por %p1270_p1, %p1269_p12 }
  0xa0   : > { %p1272_p13 = pnand %p1271_p2, %p1265_p7 }
  0xa2   : > { %1275 = shalt.err (!%p1272_p13)
}
  0xa3   : > { %s1819_s20 = smov 4   ;;  %s1820_s17 = smov 64  }
  0xa4   : > { %1055 = dma.hbm_to_vmem [thread:$0]  (!%p1627_p11), %s1623_s7, 1024, %s1625_s13, %s256_s8, %s1394_s19, %s1820_s17, %s1819_s20  }
  0xa5   : > { %s913_s9 = sshll.u32 %s1388_s24, 4  ;;  %s278_s15 = scalar_lea.vmem [#allocation5], %s1616_s12 }
  0xa6   : > { %s285_s30 = sshll.u32 %s278_s15, 4  ;;  %s1668_s0 = scalar_lea.hbm %s1791_s1, %s913_s9  ;;  %s286_s30 = int_to_ptr.vmem [resolvable:$true] %s285_s30 }
  0xa7   : > { %s1821_s2 = sand.u32 1, %s1388_s24   ;;  %s1276_s4 = scalar_lea.hbm %s1668_s0, 16 }
  0xa8   : > { %s276_s3 = scalar_lea.sflag [#allocation6], %s1821_s2  ;;  %p1277_p0 = scmp.ne.s32.totalorder %s1668_s0, %s1276_s4 }
  0xa9   : > { %s1281_s7 = scalar_lea.hbm %s1791_s1, 32  ;;  %p1282_p3 = scmp.lt.u32.totalorder %s1668_s0, %s1791_s1 }
  0xaa   : > { %p1279_p6 = pnand %p1277_p0, %p1248_p9  ;;  %p1283_p4 = scmp.lt.u32.totalorder %s1281_s7, %s1276_s4 }
  0xab   : > { %p1285_p7 = scmp.lt.u32.totalorder %s1276_s4, %s1668_s0 }
  0xac   : > { %p1280_p10 = pneg %p1279_p6  ;;  %p1284_p5 = por %p1283_p4, %p1282_p3 }
  0xae   : > { %p1286_p12 = por %p1285_p7, %p1284_p5 }
  0xb0   : > { %p1287_p1 = pnand %p1286_p12, %p1280_p10 }
  0xb2   : > { %1290 = shalt.err (!%p1287_p1)
}
  0xb3   : > { %s1291_s2 = scalar_lea.vmem %s286_s30, 16  ;;  %s1399_s20 = smov [#allocation5]  }
  0xb4   : > { %p1292_p2 = scmp.ne.s32.totalorder %s286_s30, %s1291_s2  ;;  %s1296_s17 = sshll.u32 %s1399_s20, 4  ;;  %s1297_s17 = int_to_ptr.vmem [resolvable:$false] %s1296_s17 }
  0xb5   : > { %s1298_s9 = scalar_lea.vmem %s1297_s17, 32  ;;  %p1299_p6 = scmp.lt.s32.totalorder %s286_s30, %s1297_s17 }
  0xb6   : > { %p1294_p13 = pnand %p1292_p2, %p1248_p9  ;;  %p1300_p8 = scmp.lt.s32.totalorder %s1298_s9, %s1291_s2 }
  0xb8   : > { %p1295_p0 = pneg %p1294_p13  ;;  %p1301_p3 = por %p1300_p8, %p1299_p6 }
  0xba   : > { %p1302_p4 = pnand %p1301_p3, %p1295_p0 }
  0xbc   : > { %1305 = shalt.err (!%p1302_p4)
}
  0xbd   : > { %1058 = dma.hbm_to_vmem [thread:$0]  (!%p1627_p11), %s1668_s0, 16, %s286_s30, %s276_s3  }
  0xbe   : > { %p1822_p10 = scmp.ne.s32.totalorder %s1809_s29, 0 }
  0xbf   : > { %s1694_s4 = sand.u32 (!%p1822_p10), 1, %s1380_s22   ;;  %p1823_p8 = scmp.ne.s32.totalorder (!%p1822_p10), %s1807_s27, 0 }
  0xc0   : > { %294 = sbr.rel (%p1822_p10) target bundleno = 741 (0x2e5), region = 44  ;;  %s915_s15 = sshll.u32 (!%p1822_p10), %s1694_s4, 6 }
  0xc1   : > { %s297_s14 = scalar_lea.sflag (!%p1822_p10), [#allocation3], %s1694_s4  ;;  %s1698_s18 = scalar_lea.vmem (!%p1822_p10), [#allocation2], %s915_s15 }
  0xc7   : > { %1351 = dma.done.wait (%p1823_p8), %s297_s14, 1024  }
  0xc8   : > { %1353 = vsyncadd (%p1823_p8), %s297_s14, 4294966272  ;;  %s305_s0 = sand.u32 1, %s1460_s25   ;;  %s308_s29 = scalar_lea.vmem [#allocation5], %s1694_s4 }
  0xc9   : > { %s306_s3 = scalar_lea.sflag [#allocation6], %s305_s0 }
  0xca   : > { %1355 = dma.done.wait (%p1823_p8), %s306_s3, 16  }
  0xcb   : > { %1357 = vsyncadd (%p1823_p8), %s306_s3, 4294967280  ;;  %p1824_p11 = scmp.eq.s32.totalorder %s1460_s25, 0 }
  0xcd   : > { %1359 = dma.done.wait (%p1824_p11), [#allocation6], 1024   ;;  %p1825_p9 = pmov %p1824_p11 }
  0xcf   : > { %1361 = vsyncadd (%p1825_p9), [#allocation6], 4294966272  ;;  %p1826_p5 = pmov %p1825_p9 }
  0xd1   : > { %1363 = dma.done.wait (%p1826_p5), [#allocation9], 2080   ;;  %p1827_p7 = pmov %p1826_p5 }
  0xd2   : > { %p1828_p12 = pmov %p1826_p5 }
  0xd3   : > { %1365 = vsyncadd (%p1827_p7), [#allocation9], 4294965216 }
  0xd4   : > { %1367 = dma.done.wait (%p1828_p12), [#allocation12], 64   ;;  %p1829_p1 = pmov %p1826_p5 }
  0xd5   : > { %v1400_v0 = vmov 0   ;;  %v1118_v1 = vld [vmem:[%s1698_s18] sm:$0xff]   ;;  %v1119_v2 = vld [vmem:[%s1698_s18 + $0x8] sm:$0xff]   ;;  %v1120_v3 = vld [vmem:[%s1698_s18 + $0x10] sm:$0xff]   ;;  %v1401_v34 = vmov 0.0   ;;  %vm1402_vm0 = vmmov 0  }
  0xd6   : > { %1369 = vsyncadd (%p1829_p1), [#allocation12], 4294967232  ;;  %1116 = vset.pattern.permute.xlu0 %v1400_v0  ;;  %1117 = vset.pattern.permute.xlu1 %v1400_v0  ;;  %v1121_v4 = vld [vmem:[%s1698_s18 + $0x18] sm:$0xff]   ;;  %v1126_v5 = vld [vmem:[#allocation7] sm:$0xff]   ;;  %vm758_vm2 = vcmask 1043456   ;;  %s937_s27 = sshll.u32 %s1460_s25, 4 }
  0xd7   : > { %965 = vmatprep.subr.bf16.mxu0 %v1118_v1  ;;  %981 = vmatprep.mubr.bf16.mxu0 %v1126_v5  ;;  %v1122_v6 = vld [vmem:[%s1698_s18 + $0x20] sm:$0xff]   ;;  %v1123_v7 = vld [vmem:[%s1698_s18 + $0x28] sm:$0xff]   ;;  %v391_v9 = vld [vmem:[#allocation8 + $0x10] sm:$0xff]  ;;  %s355_s10 = scalar_lea.vmem [#allocation13], %s1694_s4  ;;  %s1746_s7 = scalar_lea.hbm %s1796_s6, %s937_s27 }
  0xd8   : > { %966 = vmatpush3.bf16.msra.mxu0 %v1118_v1  ;;  %v389_v8 = vld [vmem:[#allocation8] sm:$0xff]  ;;  %417 = vperm.xlu1 %1117, %v391_v9   ;;  %v390_v10 = vld [vmem:[#allocation8 + $0x8] sm:$0xff]  ;;  %v392_v11 = vld [vmem:[#allocation8 + $0x18] sm:$0xff]  ;;  %s780_s30 = sshll.u32 %s355_s10, 4  ;;  %s768_s13 = scalar_lea.sflag [#allocation4], %s1694_s4  ;;  %s1748_s30 = int_to_ptr.vmem [resolvable:$true] %s780_s30 }
  0xd9   : > { %967 = vmatprep.subr.bf16.mxu0 %v1119_v2  ;;  %407 = vperm.xlu0 %1116, %v389_v8   ;;  %v1124_v12 = vld [vmem:[%s1698_s18 + $0x30] sm:$0xff]   ;;  %v393_v13 = vld [vmem:[#allocation8 + $0x20] sm:$0xff]  ;;  %v1125_v15 = vld [vmem:[%s1698_s18 + $0x38] sm:$0xff]   ;;  %s1306_s8 = scalar_lea.vmem %s1748_s30, 16  ;;  %p1830_p13 = scmp.ne.s32.totalorder %s1816_s11, 0 }
  0xda   : > { %v394_v14 = vld [vmem:[#allocation8 + $0x28] sm:$0xff]  ;;  %v395_v16 = vld [vmem:[#allocation8 + $0x30] sm:$0xff]  ;;  %v396_v17 = vld [vmem:[#allocation8 + $0x38] sm:$0xff]  ;;  %997 = vmatprep.subr.bf16.mxu1 %v1401_v34  ;;  %1013 = vmatprep.mubr.msk.bf16.mxu1 %vm1402_vm0, %v1401_v34  ;;  %p1307_p2 = scmp.ne.s32.totalorder %s1748_s30, %s1306_s8  ;;  %s1403_s25 = smov [#allocation13]  }
  0xdb   : > { %v1127_v18 = vld [vmem:[#allocation7 + $0x8] sm:$0xff]   ;;  %v397_v19 = vld [vmem:[#allocation8 + $0x40] sm:$0xff]  ;;  %v1128_v21 = vld [vmem:[#allocation7 + $0x10] sm:$0xff]   ;;  %s1310_s2 = sshll.u32 %s1403_s25, 4  ;;  %s1311_s2 = int_to_ptr.vmem [resolvable:$false] %s1310_s2 }
  0xdc   : > { %968 = vmatpush3.bf16.msra.mxu0 %v1119_v2  ;;  %422 = vperm.xlu1 %1117, %v392_v11   ;;  %v398_v20 = vld [vmem:[#allocation8 + $0x48] sm:$0xff]  ;;  %v399_v22 = vld [vmem:[#allocation8 + $0x50] sm:$0xff]  ;;  %v400_v23 = vld [vmem:[#allocation8 + $0x58] sm:$0xff]  ;;  %p1308_p0 = pnand %p1307_p2, %p1830_p13  ;;  %s1312_s20 = scalar_lea.vmem %s1311_s2, 32 }
  0xdd   : > { %969 = vmatprep.subr.bf16.mxu0 %v1120_v3  ;;  %412 = vperm.xlu0 %1116, %v390_v10   ;;  %v1129_v24 = vld [vmem:[#allocation7 + $0x18] sm:$0xff]   ;;  %v401_v25 = vld [vmem:[#allocation8 + $0x60] sm:$0xff]  ;;  %v402_v26 = vld [vmem:[#allocation8 + $0x68] sm:$0xff]  ;;  %p1313_p3 = scmp.lt.s32.totalorder %s1748_s30, %s1311_s2  ;;  %p1314_p4 = scmp.lt.s32.totalorder %s1312_s20, %s1306_s8 }
  0xde   : > { %v1130_v27 = vld [vmem:[#allocation7 + $0x20] sm:$0xff]   ;;  %v403_v28 = vld [vmem:[#allocation8 + $0x70] sm:$0xff]  ;;  %v404_v29 = vld [vmem:[#allocation8 + $0x78] sm:$0xff]  ;;  %p1309_p6 = pneg %p1308_p0 }
  0xdf   : > { %v1131_v30 = vld [vmem:[#allocation7 + $0x28] sm:$0xff]   ;;  %v703_v31 = vld [vmem:[#allocation11] sm:$0xf]  ;;  %v1132_v32 = vld [vmem:[#allocation7 + $0x30] sm:$0xff]   ;;  %p1315_p10 = por %p1314_p4, %p1313_p3 }
  0xe0   : > { %970 = vmatpush3.bf16.msra.mxu0 %v1120_v3  ;;  %432 = vperm.xlu1 %1117, %v394_v14   ;;  %v1133_v33 = vld [vmem:[#allocation7 + $0x38] sm:$0xff]  }
  0xe1   : > { %971 = vmatprep.subr.bf16.mxu0 %v1121_v4  ;;  %427 = vperm.xlu0 %1116, %v393_v13   ;;  %p1316_p8 = pnand %p1315_p10, %p1309_p6 }
  0xe4   : > { %972 = vmatpush3.bf16.msra.mxu0 %v1121_v4  ;;  %442 = vperm.xlu1 %1117, %v396_v17  }
  0xe5   : > { %973 = vmatprep.subr.bf16.mxu0 %v1122_v6  ;;  %437 = vperm.xlu0 %1116, %v395_v16  }
  0xe8   : > { %974 = vmatpush3.bf16.msra.mxu0 %v1122_v6  ;;  %452 = vperm.xlu1 %1117, %v398_v20  }
  0xe9   : > { %975 = vmatprep.subr.bf16.mxu0 %v1123_v7  ;;  %447 = vperm.xlu0 %1116, %v397_v19  }
  0xec   : > { %976 = vmatpush3.bf16.msra.mxu0 %v1123_v7  ;;  %462 = vperm.xlu1 %1117, %v400_v23  }
  0xed   : > { %977 = vmatprep.subr.bf16.mxu0 %v1124_v12  ;;  %457 = vperm.xlu0 %1116, %v399_v22  }
  0xf0   : > { %978 = vmatpush3.bf16.msra.mxu0 %v1124_v12  ;;  %472 = vperm.xlu1 %1117, %v402_v26  }
  0xf1   : > { %979 = vmatprep.subr.bf16.mxu0 %v1125_v15  ;;  %467 = vperm.xlu0 %1116, %v401_v25  }
  0xf4   : > { %980 = vmatpush3.bf16.msra.mxu0 %v1125_v15  ;;  %482 = vperm.xlu1 %1117, %v404_v29  }
  0xf5   : > { %477 = vperm.xlu0 %1116, %v403_v28  }
  0xf7   : > { %982 = vmatmul.mubr.bf16.vlgmr.msra.gmra.mrb[0].mxu0 %v1127_v18 }
  0xf8   : > { %985 = vmatprep.mubr.bf16.mxu0 %v1128_v21 }
  0xf9   : > { %706 = vperm.xlu0 %1116, %v703_v31  }
  0xff   : > { %986 = vmatmul.mubr.bf16.gmra.mrb[4].mxu0 %v1129_v24 }
 0x100   : > { %989 = vmatprep.mubr.bf16.mxu0 %v1130_v27 }
 0x107   : > { %990 = vmatmul.mubr.bf16.gmra.mrb[8].mxu0 %v1131_v30 }
 0x108   : > { %993 = vmatprep.mubr.bf16.mxu0 %v1132_v32 }
 0x10f   : > { %994 = vmatmul.mubr.bf16.gmra.mrb[12].mxu0 %v1133_v33 }
 0x157   : > { %v418_v36 = vpop.permute.xlu1 %417 }
 0x158   : > { %v408_v35 = vpop.permute.xlu0 %407 }
 0x15b   : > { %v423_v38 = vpop.permute.xlu1 %422 }
 0x15c   : > { %v413_v37 = vpop.permute.xlu0 %412 }
 0x15f   : > { %v433_v40 = vpop.permute.xlu1 %432 }
 0x160   : > { %v428_v39 = vpop.permute.xlu0 %427 }
 0x163   : > { %v443_v45 = vpop.permute.xlu1 %442 }
 0x164   : > { %v438_v41 = vpop.permute.xlu0 %437 }
 0x167   : > { %v453_v57 = vpop.permute.xlu1 %452 }
 0x168   : > { %v448_v53 = vpop.permute.xlu0 %447 }
 0x16b   : > { %v463_v6 = vpop.permute.xlu1 %462 }
 0x16c   : > { %v458_v2 = vpop.permute.xlu0 %457 }
 0x16f   : > { %v473_v19 = vpop.permute.xlu1 %472 }
 0x170   : > { %v468_v14 = vpop.permute.xlu0 %467 }
 0x173   : > { %v483_v31 = vpop.permute.xlu1 %482 }
 0x174   : > { %v478_v26 = vpop.permute.xlu0 %477 }
 0x1ca   : > { %v983_v42 = vpop.f32.mrb[0].mxu0 }
 0x1cb   : > { %v624_v43 = vadd.f32 %v983_v42, %v418_v36  ;;  %v615_v44 = vpop.f32.mrb[1].mxu0 }
 0x1cc   : > { %v616_v46 = vadd.f32 %v615_v44, %v408_v35  ;;  %v984_v47 = vpop.f32.mrb[2].mxu0  ;;  %v694_v44 = vld [vmem:[#allocation10] sm:$0x3] }
 0x1cd   : > { %v627_v48 = vadd.f32 %v984_v47, %v423_v38  ;;  %v618_v49 = vpop.f32.mrb[3].mxu0  ;;  %v680_v51 = vmax.f32 %v624_v43, 0.0  ;;  %v936_v47 = vld [vmem:[%s308_s29] ss:$0 sm:$0xff] }
 0x1ce   : > { %v619_v50 = vadd.f32 %v618_v49, %v413_v37  ;;  %v678_v54 = vmax.f32 %v616_v46, 0.0 }
 0x1cf   : > { %v681_v52 = vmax.f32 %v627_v48, 0.0  ;;  %v707_v48 = vpop.permute.xlu0 %706 }
 0x1d0   : > { %v679_v55 = vmax.f32 %v619_v50, 0.0 }
 0x1d1   : > { %v696_v56 = vpack.c.bf16 %v681_v52, %v680_v51 }
 0x1d2   : > { %v987_v58 = vpop.f32.mrb[4].mxu0  ;;  %v695_v59 = vpack.c.bf16 %v679_v55, %v678_v54 }
 0x1d3   : > { %v640_v60 = vadd.f32 %v987_v58, %v438_v41  ;;  %v631_v61 = vpop.f32.mrb[5].mxu0 }
 0x1d4   : > { %v632_v62 = vadd.f32 %v631_v61, %v428_v39  ;;  %v988_v63 = vpop.f32.mrb[6].mxu0  ;;  %998 = vmatpush3.bf16.msra.mxu1 %v695_v59 }
 0x1d5   : > { %v643_v0 = vadd.f32 %v988_v63, %v443_v45  ;;  %v634_v1 = vpop.f32.mrb[7].mxu0  ;;  %999 = vmatprep.subr.bf16.mxu1 %v1401_v34  ;;  %v684_v4 = vmax.f32 %v640_v60, 0.0  ;;  %v749_v45 = vlaneseq }
 0x1d6   : > { %v635_v3 = vadd.f32 %v634_v1, %v433_v40  ;;  %v682_v7 = vmax.f32 %v632_v62, 0.0 }
 0x1d7   : > { %v685_v5 = vmax.f32 %v643_v0, 0.0  ;;  %v750_v46 = vshrl.u32 %v749_v45, 7 }
 0x1d8   : > { %v683_v8 = vmax.f32 %v635_v3, 0.0  ;;  %1000 = vmatpush3.bf16.msra.mxu1 %v696_v56 }
 0x1d9   : > { %v698_v9 = vpack.c.bf16 %v685_v5, %v684_v4  ;;  %1001 = vmatprep.subr.bf16.mxu1 %v1401_v34  ;;  %vm756_vm1 = vcmp.eq.s32.totalorder %v750_v46, %v936_v47 }
 0x1da   : > { %v697_v10 = vpack.c.bf16 %v683_v8, %v682_v7  ;;  %v991_v11 = vpop.f32.mrb[8].mxu0 }
 0x1db   : > { %v656_v12 = vadd.f32 %v991_v11, %v458_v2  ;;  %v647_v13 = vpop.f32.mrb[9].mxu0 }
 0x1dc   : > { %v648_v15 = vadd.f32 %v647_v13, %v448_v53  ;;  %v992_v16 = vpop.f32.mrb[10].mxu0  ;;  %1002 = vmatpush3.bf16.msra.mxu1 %v697_v10 }
 0x1dd   : > { %v659_v17 = vadd.f32 %v992_v16, %v463_v6  ;;  %v650_v18 = vpop.f32.mrb[11].mxu0  ;;  %1003 = vmatprep.subr.bf16.mxu1 %v1401_v34  ;;  %v688_v21 = vmax.f32 %v656_v12, 0.0 }
 0x1de   : > { %v651_v20 = vadd.f32 %v650_v18, %v453_v57  ;;  %v686_v23 = vmax.f32 %v648_v15, 0.0 }
 0x1df   : > { %v689_v22 = vmax.f32 %v659_v17, 0.0 }
 0x1e0   : > { %v687_v24 = vmax.f32 %v651_v20, 0.0  ;;  %1004 = vmatpush3.bf16.msra.mxu1 %v698_v9 }
 0x1e1   : > { %v700_v25 = vpack.c.bf16 %v689_v22, %v688_v21  ;;  %1005 = vmatprep.subr.bf16.mxu1 %v1401_v34 }
 0x1e2   : > { %v699_v27 = vpack.c.bf16 %v687_v24, %v686_v23  ;;  %v995_v28 = vpop.f32.mrb[12].mxu0 }
 0x1e3   : > { %v672_v29 = vadd.f32 %v995_v28, %v478_v26  ;;  %v663_v30 = vpop.f32.mrb[13].mxu0 }
 0x1e4   : > { %v664_v32 = vadd.f32 %v663_v30, %v468_v14  ;;  %v996_v33 = vpop.f32.mrb[14].mxu0  ;;  %1006 = vmatpush3.bf16.msra.mxu1 %v699_v27 }
 0x1e5   : > { %v675_v35 = vadd.f32 %v996_v33, %v483_v31  ;;  %v666_v36 = vpop.f32.mrb[15].mxu0  ;;  %1007 = vmatprep.subr.bf16.mxu1 %v1401_v34  ;;  %v692_v38 = vmax.f32 %v672_v29, 0.0 }
 0x1e6   : > { %v667_v37 = vadd.f32 %v666_v36, %v473_v19  ;;  %v690_v40 = vmax.f32 %v664_v32, 0.0 }
 0x1e7   : > { %v693_v39 = vmax.f32 %v675_v35, 0.0 }
 0x1e8   : > { %v691_v41 = vmax.f32 %v667_v37, 0.0  ;;  %1008 = vmatpush3.bf16.msra.mxu1 %v700_v25 }
 0x1e9   : > { %v702_v42 = vpack.c.bf16 %v693_v39, %v692_v38  ;;  %1009 = vmatprep.subr.bf16.mxu1 %v1401_v34 }
 0x1ea   : > { %v701_v43 = vpack.c.bf16 %v691_v41, %v690_v40 }
 0x1ec   : > { %1010 = vmatpush3.bf16.msra.mxu1 %v701_v43 }
 0x1ed   : > { %1011 = vmatprep.subr.bf16.mxu1 %v1401_v34 }
 0x1f0   : > { %1012 = vmatpush3.bf16.msra.mxu1 %v702_v42 }
 0x1f3   : > { %1014 = vmatmul.mubr.bf16.vlgmr.msra.gmra.mrb[0].mxu1 %v694_v44 }
 0x2c6   : > { %v743_v49 = vpop.f32.mrb[0].mxu1 }
 0x2c7   : > { %v744_v50 = vadd.f32 %v743_v49, %v707_v48  ;;  %v1015_v51 = vpop.f32.mrb[1].mxu1 }
 0x2c8   : > { %v746_v52 = vpop.f32.mrb[2].mxu1 }
 0x2c9   : > { %v757_v53 = vsel %vm756_vm1, %v744_v50, 0.0  ;;  %v1016_v54 = vpop.f32.mrb[3].mxu1 }
 0x2ca   : > { %v759_v34 = vsel %vm758_vm2, %v757_v53, 0.0 }
 0x2cb   : > { %v760_v55 = vrot.slane %v759_v34, 4 }
 0x2cd   : > { %v761_v56 = vadd.f32 %v760_v55, %v759_v34 }
 0x2cf   : > { %v762_v57 = vrot.slane %v761_v56, 2 }
 0x2d1   : > { %v763_v58 = vadd.f32 %v762_v57, %v761_v56 }
 0x2d3   : > { %v764_v59 = vrot.slane %v763_v58, 1 }
 0x2d5   : > { %v765_v60 = vadd.f32 %v764_v59, %v763_v58 }
 0x2d7   : > { %766 = vst [vmem:[%s355_s10] sm:$0x1] %v765_v60 }
 0x2d8   : > { %1319 = shalt.err (!%p1316_p8)
}
 0x2d9   : > { %s1320_s17 = scalar_lea.hbm %s1746_s7, 16  ;;  %s1324_s15 = scalar_lea.hbm %s1796_s6, 32 }
 0x2da   : > { %p1321_p11 = scmp.ne.s32.totalorder %s1746_s7, %s1320_s17  ;;  %p1325_p7 = scmp.lt.u32.totalorder %s1746_s7, %s1796_s6 }
 0x2db   : > { %p1326_p12 = scmp.lt.u32.totalorder %s1324_s15, %s1320_s17  ;;  %p1328_p2 = scmp.lt.u32.totalorder %s1320_s17, %s1746_s7 }
 0x2dc   : > { %p1322_p9 = pnand %p1321_p11, %p1830_p13 }
 0x2dd   : > { %p1327_p1 = por %p1326_p12, %p1325_p7 }
 0x2de   : > { %p1323_p5 = pneg %p1322_p9 }
 0x2df   : > { %p1329_p0 = por %p1328_p2, %p1327_p1 }
 0x2e1   : > { %p1330_p6 = pnand %p1329_p0, %p1323_p5 }
 0x2e3   : > { %1333 = shalt.err (!%p1330_p6)
}
 0x2e4   : > { %1037 = dma.vmem_to_hbm [thread:$0]  (%p1830_p13), %s1748_s30, 16, %s1746_s7, %s768_s13  }
 0x2e5 PF: > { %s792_s0 = sand.u32 1, %s1376_s21   ;;  %p1831_p3 = scmp.ne.s32.totalorder %s1808_s28, 0 }
 0x2e6   : > { %p1832_p4 = scmp.ge.s32.totalorder %s1388_s24, 2  ;;  %s793_s3 = scalar_lea.sflag [#allocation4], %s792_s0 }
 0x2e8   : > { %p1060_p10 = pnand %p1832_p4, %p1831_p3 }
 0x2ea   : > { %1371 = dma.done.wait (!%p1060_p10), %s793_s3, 16  }
 0x2eb   : > { %1373 = vsyncadd (!%p1060_p10), %s793_s3, 4294967280  ;;  %p24_p8 = scmp.ge.s32.totalorder %s1597_s16, 4   ;;  %s1833_s21 = smov %s1380_s22 }
 0x2ec   : > { %s1834_s22 = smov %s1384_s23  ;;  %s1835_s23 = smov %s1606_s26 }
 0x2ed   : > { %s1836_s24 = smov %s1597_s16  ;;  %26 = sbr.rel (!%p24_p8) target bundleno = 14 (0xe), region = 118 }
 0x2f4   :  { %797 = vsyncpa [#allocation3], 1 }
 0x2f5   :  { %799 = vsyncpa [#allocation3 + $0x1], 1 }
 0x2f6   :  { %800 = vsyncpa [#allocation6], 1 }
 0x2f7   :  { %802 = vsyncpa [#allocation6 + $0x1], 1 }
 0x2f8   :  { %803 = vsyncpa [#allocation9], 1 }
 0x2f9   :  { %804 = vsyncpa [#allocation12], 1 }
 0x2fa   :  { %805 = vsyncpa [#allocation4], 1 }
 0x2fb   :  { %807 = vsyncpa [#allocation4 + $0x1], 1 }

</bundles_post_ra>
